<compile_context>
chip_gen: v7x
topology: tpu7x:2x2x1
jax: 0.10.0
libtpu: 0.0.40
codegen_flags: <defaults>
</compile_context>

<pallas_src>
import functools
import math

import jax
import jax.numpy as jnp
from jax.experimental import pallas as pl
from jax.experimental.pallas import tpu as pltpu


def _se_weight_kernel(x_ref, w1_ref, b1_ref, w2_ref, b2_ref, o_ref, acc_ref, *,
                      hw_total, tile_hw, lane, rem, c_strip, need_mask):
    """Grid = (batch tiles, HW tiles); HW is the reduction ('arbitrary') axis.

    x_ref   : (tile_N, C, tile_hw)  input block (native dtype)
    w1_ref  : (C, Cr)  fc1 weight (pre-transposed, f32);  b1_ref: (1, Cr)
    w2_ref  : (Cr, C)  fc2 weight (pre-transposed, f32);  b2_ref: (1, C)
    o_ref   : (tile_N, C, 1)  sigmoid weights (f32)
    acc_ref : (tile_N, C, lane)  f32 lane-resident pooled-sum accumulator
    """
    hw_idx = pl.program_id(1)
    last_hw = pl.num_programs(1) - 1
    C = acc_ref.shape[1]
    n_full = (tile_hw - rem) // lane          # full lane-wide chunks per tile

    @pl.when(hw_idx == 0)
    def _():
        acc_ref[...] = jnp.zeros_like(acc_ref)

    def accumulate(masked):
        # Fold lane chunks of the x tile into acc_ref one C-strip at a time so
        # the live partial stays at <= ~16 vregs (tile_N * c_strip <= 128
        # sublane rows) instead of spilling the whole register file.
        if masked:
            base = hw_idx * tile_hw
            lane_iota = jax.lax.broadcasted_iota(jnp.int32, (1, 1, lane), 2)
        for c0 in range(0, C, c_strip):
            cs = min(c_strip, C - c0)
            strip = None
            for j in range(n_full):
                chunk = x_ref[:, c0:c0 + cs,
                              j * lane:(j + 1) * lane].astype(jnp.float32)
                if masked:
                    pos = base + j * lane + lane_iota
                    chunk = jnp.where(pos < hw_total, chunk, 0.0)
                strip = chunk if strip is None else strip + chunk
            if strip is not None:
                acc_ref[:, c0:c0 + cs, :] += strip
            if rem:
                # Single (full-HW) tile with HW % 128 != 0: fold the
                # sub-lane-width tail into the low lanes of the accumulator.
                tail = x_ref[:, c0:c0 + cs,
                             n_full * lane:tile_hw].astype(jnp.float32)
                acc_ref[:, c0:c0 + cs, 0:rem] += tail

    if need_mask:
        # Only the last HW tile can read past H*W (Pallas pads the ragged
        # block); keep the mask/iota/select out of the steady state.
        @pl.when(hw_idx < last_hw)
        def _():
            accumulate(masked=False)

        @pl.when(hw_idx == last_hw)
        def _():
            accumulate(masked=True)
    else:
        accumulate(masked=False)

    # Epilogue (once per batch tile): finish the mean, fc1 -> ReLU -> fc2 ->
    # sigmoid. One XLU reduce + two tiny MXU matmuls; negligible vs the
    # HBM stream.
    @pl.when(hw_idx == last_hw)
    def _():
        pooled = jnp.sum(acc_ref[...], axis=-1) * (1.0 / hw_total)   # (TN, C)
        h = jnp.dot(pooled, w1_ref[...],
                    preferred_element_type=jnp.float32) + b1_ref[...]  # (TN, Cr)
        h = jnp.maximum(h, 0.0)
        o = jnp.dot(h, w2_ref[...],
                    preferred_element_type=jnp.float32) + b2_ref[...]  # (TN, C)
        sig = 1.0 / (1.0 + jnp.exp(-o))
        o_ref[...] = sig[:, :, None].astype(o_ref.dtype)


def _vmem_capacity_bytes():
    try:
        return int(pltpu.get_tpu_info().vmem_capacity_bytes)
    except Exception:
        return 64 << 20        # conservative fallback (v7x per-TensorCore VMEM)


def se_weight_module(x, w1, b1, w2, b2, *, x_tile_bytes=None):
    """x: (N, C, H, W). Weights in (squeezed) PyTorch 1x1-conv layout:
       w1: (Cr, C), b1: (Cr,), w2: (C, Cr), b2: (C,)  with Cr = C // reduction.
    Returns (N, C, 1, 1) sigmoid attention weights (== SEWeightModule.forward).
    """
    N, C, H, W = x.shape
    Cr = w1.shape[0]
    HW = H * W
    x_flat = x.reshape(N, C, HW)                      # stream in native dtype
    itemsize = jnp.dtype(x_flat.dtype).itemsize

    # ---- generation-aware budgets ------------------------------------------
    vmem_cap = _vmem_capacity_bytes()
    if x_tile_bytes is None:
        # Bigger streaming blocks on 128-MiB-VMEM parts (v5e/v6e), tighter on
        # v7x (64 MiB physical per TensorCore).
        x_tile_bytes = (8 << 20) if vmem_cap >= (100 << 20) else (4 << 20)
    x_tile_bytes = max(64 * 1024, min(int(x_tile_bytes), vmem_cap // 4))

    # ---- accumulator geometry ----------------------------------------------
    # Accumulator lane width is always <= 128, so the scratch never balloons
    # to (tile_N, C, HW) for non-multiple-of-128 single-tile shapes.
    lane = 128 if HW >= 128 else HW

    # Batch tile: <= 8 sublane rows, bounded so the f32 accumulator stays
    # <= ~2 MiB, and (for N > 1) so the "parallel" batch axis has >= 2 blocks
    # (both v7x TensorCores get work; harmless on single-TC v5e/v6e).
    acc_budget = 2 << 20
    tile_N = max(1, min(N, 8, acc_budget // max(1, C * lane * 4)))
    if N > 1:
        tile_N = min(tile_N, pl.cdiv(N, 2))
    # TODO(synk): for N == 1 on v7x the HW axis could be split across the two
    # TensorCores with a tiny second combine pass; not implemented here.

    def _lanes_for(tn):
        return max(128, (x_tile_bytes // max(1, tn * C * itemsize)) // 128 * 128)

    # Large-C rebalance: prefer tile_N = 1 over short contiguous HBM rows
    # (keep each contiguous run >= ~8 KiB when possible).
    while tile_N > 1 and _lanes_for(tile_N) * itemsize < 8192:
        tile_N = max(1, tile_N // 2)
    lanes = _lanes_for(tile_N)

    if HW <= lanes:                       # whole spatial dim in one block
        tile_hw = HW
        need_mask = False
        rem = HW % lane if HW >= 128 else 0
    else:                                 # stream HW in multiple-of-128 tiles
        tile_hw = lanes
        need_mask = (HW % tile_hw) != 0   # mask only the ragged last tile
        rem = 0

    n_tiles = pl.cdiv(N, tile_N)
    hw_tiles = pl.cdiv(HW, tile_hw)

    # Sublane-strip width of the in-kernel fold: tile_N * c_strip <= 128 rows
    # (~16 live f32 vregs), multiple of 8.
    c_strip = max(8, min(C, (128 // tile_N) // 8 * 8))

    # ---- explicit VMEM budget (double-buffered x block + acc + residents) ---
    x_block_bytes = tile_N * C * tile_hw * itemsize
    acc_bytes = tile_N * C * lane * 4
    fixed_bytes = 4 * (C * Cr + Cr + Cr * C + C) + tile_N * C * 4
    needed = 2 * x_block_bytes + acc_bytes + 2 * fixed_bytes
    vmem_limit = int(min(max(needed + (4 << 20), 32 << 20), vmem_cap * 3 // 4))

    # ---- weights: pre-transpose so the kernel does plain row-major matmuls --
    w1_t = jnp.asarray(w1, jnp.float32).T             # (C, Cr)
    w2_t = jnp.asarray(w2, jnp.float32).T             # (Cr, C)
    b1_r = jnp.asarray(b1, jnp.float32).reshape(1, Cr)
    b2_r = jnp.asarray(b2, jnp.float32).reshape(1, C)

    kernel = functools.partial(
        _se_weight_kernel, hw_total=HW, tile_hw=tile_hw, lane=lane, rem=rem,
        c_strip=c_strip, need_mask=need_mask)

    # NOTE: if blocks ever end up tiny (large-C remainder-heavy shapes) on v7x,
    # pipeline_mode=pl.Buffered(3) on the x spec can hide DMA issue latency;
    # not needed at the default multi-MiB blocks chosen above.
    out = pl.pallas_call(
        kernel,
        out_shape=jax.ShapeDtypeStruct((N, C, 1), jnp.float32),
        grid_spec=pltpu.PrefetchScalarGridSpec(
            num_scalar_prefetch=0,
            grid=(n_tiles, hw_tiles),
            in_specs=[
                pl.BlockSpec((tile_N, C, tile_hw), lambda n, hw: (n, 0, hw)),
                pl.BlockSpec((C, Cr), lambda n, hw: (0, 0)),    # resident
                pl.BlockSpec((1, Cr), lambda n, hw: (0, 0)),    # resident
                pl.BlockSpec((Cr, C), lambda n, hw: (0, 0)),    # resident
                pl.BlockSpec((1, C), lambda n, hw: (0, 0)),     # resident
            ],
            out_specs=pl.BlockSpec((tile_N, C, 1), lambda n, hw: (n, 0, 0)),
            scratch_shapes=[pltpu.VMEM((tile_N, C, lane), jnp.float32)],
        ),
        compiler_params=pltpu.CompilerParams(
            dimension_semantics=("parallel", "arbitrary"),
            vmem_limit_bytes=vmem_limit),
    )(x_flat, w1_t, b1_r, w2_t, b2_r)

    return out.reshape(N, C, 1, 1).astype(x.dtype)


def _reference(x, w1, b1, w2, b2):
    xf = jnp.asarray(x, jnp.float32)
    pooled = jnp.mean(xf, axis=(2, 3))                                   # (N, C)
    h = jnp.maximum(pooled @ jnp.asarray(w1, jnp.float32).T
                    + jnp.asarray(b1, jnp.float32), 0.0)                 # (N, Cr)
    o = jax.nn.sigmoid(h @ jnp.asarray(w2, jnp.float32).T
                       + jnp.asarray(b2, jnp.float32))                   # (N, C)
    return o[:, :, None, None]


if __name__ == "__main__":
    key = jax.random.PRNGKey(0)
    kx1, k1, kb1, k2, kb2, kx2, kx3 = jax.random.split(key, 7)

    # Module-consistent sizes: channels divisible by reduction=16.
    C, reduction = 64, 16
    Cr = C // reduction

    w1 = jax.random.normal(k1, (Cr, C), dtype=jnp.float32) * (1.0 / math.sqrt(C))
    b1 = jax.random.normal(kb1, (Cr,), dtype=jnp.float32) * 0.01
    w2 = jax.random.normal(k2, (C, Cr), dtype=jnp.float32) * (1.0 / math.sqrt(Cr))
    b2 = jax.random.normal(kb2, (C,), dtype=jnp.float32) * 0.01

    # Case 1: small, HW a multiple of 128 -> single-tile fast path.
    x1 = jax.random.normal(kx1, (2, C, 16, 16), dtype=jnp.float32)
    out1 = jax.block_until_ready(se_weight_module(x1, w1, b1, w2, b2))
    ref1 = _reference(x1, w1, b1, w2, b2)
    assert out1.shape == (2, C, 1, 1)
    assert jnp.allclose(out1, ref1, atol=1e-5, rtol=1e-5)

    # Case 2: force tiny streaming blocks -> multiple HW tiles with a ragged
    # (masked) last tile; exercises the unmasked/masked pl.when split.
    x2 = jax.random.normal(kx2, (10, C, 33, 33), dtype=jnp.float32)
    out2 = jax.block_until_ready(
        se_weight_module(x2, w1, b1, w2, b2, x_tile_bytes=64 * 1024))
    ref2 = _reference(x2, w1, b1, w2, b2)
    assert out2.shape == (10, C, 1, 1)
    assert jnp.allclose(out2, ref2, atol=1e-5, rtol=1e-5)

    # Case 3: single full-HW tile with HW % 128 != 0 (sub-lane-width tail)
    # and a partial last batch tile (N % tile_N != 0).
    x3 = jax.random.normal(kx3, (3, C, 15, 15), dtype=jnp.float32)
    out3 = jax.block_until_ready(se_weight_module(x3, w1, b1, w2, b2))
    ref3 = _reference(x3, w1, b1, w2, b2)
    assert out3.shape == (3, C, 1, 1)
    assert jnp.allclose(out3, ref3, atol=1e-5, rtol=1e-5)

    print("KERNEL_OK")
</pallas_src>

<mosaic_0001>
module attributes {stable_mosaic.version = 11 : i64} {
  func.func @_se_weight_kernel(%arg0: i32, %arg1: i32, %arg2: memref<1x64x256xf32, #tpu.memory_space<vmem>>, %arg3: memref<64x4xf32, #tpu.memory_space<vmem>>, %arg4: memref<1x4xf32, #tpu.memory_space<vmem>>, %arg5: memref<4x64xf32, #tpu.memory_space<vmem>>, %arg6: memref<1x64xf32, #tpu.memory_space<vmem>>, %arg7: memref<1x64x1xf32, #tpu.memory_space<vmem>>, %arg8: memref<1x64x128xf32, #tpu.memory_space<vmem>>) attributes {dimension_semantics = [#tpu.dimension_semantics<parallel>, #tpu.dimension_semantics<arbitrary>], iteration_bounds = array<i64: 2, 1>, scalar_prefetch = 0 : i64, scratch_operands = 1 : i64, tpu.core_type = #tpu.core_type<tc>, window_params = [{transform_indices = @transform_0, window_bounds = array<i64: 1, 64, 256>}, {pipeline_mode = #tpu.pipeline_mode<synchronous>, transform_indices = @transform_1, window_bounds = array<i64: 64, 4>}, {pipeline_mode = #tpu.pipeline_mode<synchronous>, transform_indices = @transform_2, window_bounds = array<i64: 1, 4>}, {pipeline_mode = #tpu.pipeline_mode<synchronous>, transform_indices = @transform_3, window_bounds = array<i64: 4, 64>}, {pipeline_mode = #tpu.pipeline_mode<synchronous>, transform_indices = @transform_4, window_bounds = array<i64: 1, 64>}, {transform_indices = @transform_5, window_bounds = array<i64: 1, 64, 1>}]} {
    %c0_i32 = arith.constant 0 : i32
    %0 = arith.cmpi eq, %arg1, %c0_i32 : i32
    %1 = arith.extui %0 : i1 to i32
    %c0_i32_0 = arith.constant 0 : i32
    %2 = arith.cmpi ne, %1, %c0_i32_0 : i32
    scf.if %2 {
      %cst = arith.constant 0.000000e+00 : f32
      %12 = vector.broadcast %cst : f32 to vector<1x64x128xf32>
      %c0_13 = arith.constant 0 : index
      %c0_14 = arith.constant 0 : index
      %c0_15 = arith.constant 0 : index
      %13 = vector.load %arg8[%c0_13, %c0_14, %c0_15] : memref<1x64x128xf32, #tpu.memory_space<vmem>>, vector<1x64x128xf32>
      tpu.vector_store %arg8[%c0_13, %c0_14, %c0_15], %12 {strides = array<i32>} : memref<1x64x128xf32, #tpu.memory_space<vmem>>, vector<1x64x128xf32>,
    } else {
    }
    %c0 = arith.constant 0 : index
    %c0_1 = arith.constant 0 : index
    %c0_2 = arith.constant 0 : index
    %3 = vector.load %arg2[%c0, %c0_1, %c0_2] : memref<1x64x256xf32, #tpu.memory_space<vmem>>, vector<1x64x128xf32>
    %c0_3 = arith.constant 0 : index
    %c0_4 = arith.constant 0 : index
    %c128 = arith.constant 128 : index
    %4 = vector.load %arg2[%c0_3, %c0_4, %c128] : memref<1x64x256xf32, #tpu.memory_space<vmem>>, vector<1x64x128xf32>
    %5 = arith.addf %3, %4 : vector<1x64x128xf32>
    %c0_5 = arith.constant 0 : index
    %c0_6 = arith.constant 0 : index
    %c0_7 = arith.constant 0 : index
    %6 = vector.load %arg8[%c0_5, %c0_6, %c0_7] : memref<1x64x128xf32, #tpu.memory_space<vmem>>, vector<1x64x128xf32>
    %7 = arith.addf %6, %5 : vector<1x64x128xf32>
    %c0_8 = arith.constant 0 : index
    %c0_9 = arith.constant 0 : index
    %c0_10 = arith.constant 0 : index
    %8 = vector.load %arg8[%c0_8, %c0_9, %c0_10] : memref<1x64x128xf32, #tpu.memory_space<vmem>>, vector<1x64x128xf32>
    tpu.vector_store %arg8[%c0_8, %c0_9, %c0_10], %7 {strides = array<i32>} : memref<1x64x128xf32, #tpu.memory_space<vmem>>, vector<1x64x128xf32>,
    %c0_i32_11 = arith.constant 0 : i32
    %9 = arith.cmpi eq, %arg1, %c0_i32_11 : i32
    %10 = arith.extui %9 : i1 to i32
    %c0_i32_12 = arith.constant 0 : i32
    %11 = arith.cmpi ne, %10, %c0_i32_12 : i32
    scf.if %11 {
      %c0_13 = arith.constant 0 : index
      %c0_14 = arith.constant 0 : index
      %c0_15 = arith.constant 0 : index
      %12 = vector.load %arg8[%c0_13, %c0_14, %c0_15] : memref<1x64x128xf32, #tpu.memory_space<vmem>>, vector<1x64x128xf32>
      %cst = arith.constant dense<0.000000e+00> : vector<1x64xf32>
      %13 = vector.multi_reduction <add>, %12, %cst [2] : vector<1x64x128xf32> to vector<1x64xf32>
      %cst_16 = arith.constant 3.906250e-03 : f32
      %14 = vector.broadcast %cst_16 : f32 to vector<1x64xf32>
      %15 = arith.mulf %13, %14 : vector<1x64xf32>
      %c0_17 = arith.constant 0 : index
      %c0_18 = arith.constant 0 : index
      %16 = vector.load %arg3[%c0_17, %c0_18] : memref<64x4xf32, #tpu.memory_space<vmem>>, vector<64x4xf32>
      %cst_19 = arith.constant dense<0.000000e+00> : vector<1x4xf32>
      %17 = tpu.matmul %15, %16, %cst_19 {dimension_numbers = #tpu.dot_dimension_numbers<[1], [0], [0], [1], [0, 0, 1, 1], [], []>} : vector<1x64xf32>, vector<64x4xf32>, vector<1x4xf32> -> vector<1x4xf32>
      %c0_20 = arith.constant 0 : index
      %c0_21 = arith.constant 0 : index
      %18 = vector.load %arg4[%c0_20, %c0_21] : memref<1x4xf32, #tpu.memory_space<vmem>>, vector<1x4xf32>
      %19 = arith.addf %17, %18 : vector<1x4xf32>
      %cst_22 = arith.constant 0.000000e+00 : f32
      %20 = vector.broadcast %cst_22 : f32 to vector<1x4xf32>
      %21 = arith.maximumf %19, %20 : vector<1x4xf32>
      %c0_23 = arith.constant 0 : index
      %c0_24 = arith.constant 0 : index
      %22 = vector.load %arg5[%c0_23, %c0_24] : memref<4x64xf32, #tpu.memory_space<vmem>>, vector<4x64xf32>
      %cst_25 = arith.constant dense<0.000000e+00> : vector<1x64xf32>
      %23 = tpu.matmul %21, %22, %cst_25 {dimension_numbers = #tpu.dot_dimension_numbers<[1], [0], [0], [1], [0, 0, 1, 1], [], []>} : vector<1x4xf32>, vector<4x64xf32>, vector<1x64xf32> -> vector<1x64xf32>
      %c0_26 = arith.constant 0 : index
      %c0_27 = arith.constant 0 : index
      %24 = vector.load %arg6[%c0_26, %c0_27] : memref<1x64xf32, #tpu.memory_space<vmem>>, vector<1x64xf32>
      %25 = arith.addf %23, %24 : vector<1x64xf32>
      %cst_28 = arith.constant 0.000000e+00 : f32
      %26 = vector.broadcast %cst_28 : f32 to vector<1x64xf32>
      %27 = arith.subf %26, %25 : vector<1x64xf32>
      %28 = math.exp %27 : vector<1x64xf32>
      %cst_29 = arith.constant 1.000000e+00 : f32
      %29 = vector.broadcast %cst_29 : f32 to vector<1x64xf32>
      %30 = arith.addf %29, %28 : vector<1x64xf32>
      %cst_30 = arith.constant 1.000000e+00 : f32
      %31 = vector.broadcast %cst_30 : f32 to vector<1x64xf32>
      %32 = arith.divf %31, %30 : vector<1x64xf32>
      %33 = vector.shape_cast %32 : vector<1x64xf32> to vector<1x64x1xf32>
      %c0_31 = arith.constant 0 : index
      %c0_32 = arith.constant 0 : index
      %c0_33 = arith.constant 0 : index
      %34 = vector.load %arg7[%c0_31, %c0_32, %c0_33] : memref<1x64x1xf32, #tpu.memory_space<vmem>>, vector<1x64x1xf32>
      tpu.vector_store %arg7[%c0_31, %c0_32, %c0_33], %33 {strides = array<i32>} : memref<1x64x1xf32, #tpu.memory_space<vmem>>, vector<1x64x1xf32>,
    } else {
    }
    return
  }
  func.func @transform_0(%arg0: i32, %arg1: i32) -> (i32, i32, i32) {
    %c0_i32 = arith.constant 0 : i32
    %c0_i32_0 = arith.constant 0 : i32
    return %arg0, %c0_i32, %arg1 : i32, i32, i32
  }
  func.func @transform_1(%arg0: i32, %arg1: i32) -> (i32, i32) {
    %c0_i32 = arith.constant 0 : i32
    %c0_i32_0 = arith.constant 0 : i32
    %c0_i32_1 = arith.constant 0 : i32
    return %c0_i32, %c0_i32_0 : i32, i32
  }
  func.func @transform_2(%arg0: i32, %arg1: i32) -> (i32, i32) {
    %c0_i32 = arith.constant 0 : i32
    %c0_i32_0 = arith.constant 0 : i32
    %c0_i32_1 = arith.constant 0 : i32
    return %c0_i32, %c0_i32_0 : i32, i32
  }
  func.func @transform_3(%arg0: i32, %arg1: i32) -> (i32, i32) {
    %c0_i32 = arith.constant 0 : i32
    %c0_i32_0 = arith.constant 0 : i32
    %c0_i32_1 = arith.constant 0 : i32
    return %c0_i32, %c0_i32_0 : i32, i32
  }
  func.func @transform_4(%arg0: i32, %arg1: i32) -> (i32, i32) {
    %c0_i32 = arith.constant 0 : i32
    %c0_i32_0 = arith.constant 0 : i32
    %c0_i32_1 = arith.constant 0 : i32
    return %c0_i32, %c0_i32_0 : i32, i32
  }
  func.func @transform_5(%arg0: i32, %arg1: i32) -> (i32, i32, i32) {
    %c0_i32 = arith.constant 0 : i32
    %c0_i32_0 = arith.constant 0 : i32
    %c0_i32_1 = arith.constant 0 : i32
    return %arg0, %c0_i32, %c0_i32_0 : i32, i32, i32
  }
}

</mosaic_0001>

<bundles_post_ra>
// kernel: tpu_custom_call.1
= control target key start
LH: loop header
LB: loop body
LE: loop exit
PB: predicated region body
PF: predicated region fallthrough
CT: control target
= control target key end

     0   :  { %10 = vsyncpa [#allocation4], 0  ;;  %s1135_s0 = inlined_call_operand.hbm [shape: f32[2,64,256], index: 0, kind: input, shape index: {}]   ;;  %s1136_s1 = inlined_call_operand.vmem [shape: f32[64,4], index: 1, kind: input, shape index: {}]   ;;  %s1137_s2 = inlined_call_operand.vmem [shape: f32[1,4], index: 2, kind: input, shape index: {}]   ;;  %s1138_s3 = inlined_call_operand.vmem [shape: f32[4,64], index: 3, kind: input, shape index: {}]   ;;  %s1139_s4 = inlined_call_operand.vmem [shape: f32[1,64], index: 4, kind: input, shape index: {}]   ;;  %s1140_s5 = inlined_call_operand.vmem [shape: f32[2,64,1], index: 5, kind: output, shape index: {}]  }
   0x1   :  { %12 = vsyncpa [#allocation4 + $0x1], 0  ;;  %s958_s18 = smov 0   ;;  %s960_s19 = smov 0  }
   0x2   :  { %s962_s20 = smov 0   ;;  %s964_s21 = smov 0  }
   0x3   :  { %s966_s22 = smov 0   ;;  %s968_s23 = smov 0  }
   0x4 LB: > { %s711_s24 = sadd.s32 4294967295, %s920_s23   ;;  %s30_s25 = sadd.s32 1, %s916_s22  ;;  %s920_s23 = sphi %s968_s23, %s18_s23   ;;  %s916_s22 = sphi %s966_s22, %s1148_s22   ;;  %s912_s21 = sphi %s964_s21, %s1147_s21   ;;  %s908_s20 = sphi %s962_s20, %s1146_s20   ;;  %s904_s19 = sphi %s960_s19, %s1145_s19   ;;  %s900_s18 = sphi %s958_s18, %s1144_s18  }
   0x5   : > { %p32_p0 = scmp.ge.s32.totalorder %s30_s25, 2  ;;  %s39_s26 = sadd.s32 1, %s908_s20 }
   0x6   : > { %p46_p1 = scmp.ne.s32.totalorder %s908_s20, %s904_s19  ;;  %p47_p2 = scmp.eq.s32.totalorder %s920_s23, 0 }
   0x7   : > { %s1150_s25 = smov (%p32_p0, %s30_s25), 0  ;;  %p52_p4 = scmp.ne.s32.totalorder %s904_s19, %s900_s18 }
   0x8   : > { %p994_p3 = por %p47_p2, %p46_p1  ;;  %s34_s28 = ssub.s32 %s916_s22, %s1150_s25 }
   0x9   : > { %p53_p5 = scmp.eq.s32.totalorder %s711_s24, 0  ;;  %p37_p6 = scmp.eq.s32.totalorder %s34_s28, 0 }
   0xa   : > { %p782_p8 = scmp.lt.s32.totalorder %s920_s23, 2  ;;  %s198_s6 = sand.u32 1, %s908_s20  }
   0xb   : > { %p1001_p7 = por %p53_p5, %p52_p4  ;;  %s727_s7 = sshll.u32 %s916_s22, 11 }
   0xc   : > { %s1007_s30 = scalar_select %p37_p6, %s908_s20, %s39_s26  }
   0xd   : > { %s715_s8 = sshll.u32 %s198_s6, 7  ;;  %s1014_s11 = scalar_lea.hbm %s1135_s0, %s727_s7 }
   0xe   : > { %s202_s12 = scalar_lea.vmem [#allocation3], %s715_s8  ;;  %p1018_p9 = pnand %p782_p8, %p994_p3 }
   0xf   : > { %s211_s13 = sshll.u32 %s202_s12, 4  ;;  %s1024_s15 = scalar_lea.sflag [#allocation4], %s198_s6  ;;  %s1022_s13 = int_to_ptr.vmem [resolvable:$true] %s211_s13 }
  0x10   : > { %s840_s16 = scalar_lea.hbm %s1014_s11, 2048  ;;  %p842_p11 = pneg %p1018_p9 }
  0x11   : > { %p841_p10 = scmp.ne.s32.totalorder %s1014_s11, %s840_s16  ;;  %s845_s24 = scalar_lea.hbm %s1135_s0, 4096 }
  0x12   : > { %p846_p0 = scmp.lt.u32.totalorder %s1014_s11, %s1135_s0  ;;  %p847_p1 = scmp.lt.u32.totalorder %s845_s24, %s840_s16 }
  0x13   : > { %p843_p12 = pnand %p842_p11, %p841_p10  ;;  %p849_p3 = scmp.lt.u32.totalorder %s840_s16, %s1014_s11 }
  0x14   : > { %p848_p2 = por %p847_p1, %p846_p0 }
  0x15   : > { %p844_p13 = pneg %p843_p12 }
  0x16   : > { %p850_p4 = por %p849_p3, %p848_p2 }
  0x18   : > { %p851_p5 = pnand %p850_p4, %p844_p13 }
  0x1a   : > { %854 = shalt.err (!%p851_p5)
}
  0x1b   : > { %s855_s28 = scalar_lea.vmem %s1022_s13, 2048  ;;  %s922_s6 = smov [#allocation3]  }
  0x1c   : > { %p856_p6 = scmp.ne.s32.totalorder %s1022_s13, %s855_s28  ;;  %s860_s7 = sshll.u32 %s922_s6, 4  ;;  %s861_s7 = int_to_ptr.vmem [resolvable:$false] %s860_s7 }
  0x1d   : > { %s862_s8 = scalar_lea.vmem %s861_s7, 4096  ;;  %p863_p12 = scmp.lt.s32.totalorder %s1022_s13, %s861_s7 }
  0x1e   : > { %p858_p8 = pnand %p856_p6, %p842_p11  ;;  %p864_p0 = scmp.lt.s32.totalorder %s862_s8, %s855_s28 }
  0x20   : > { %p859_p10 = pneg %p858_p8  ;;  %p865_p1 = por %p864_p0, %p863_p12 }
  0x22   : > { %p866_p2 = pnand %p865_p1, %p859_p10 }
  0x24   : > { %869 = shalt.err (!%p866_p2)
}
  0x25   : > { %s923_s9 = smov 256   ;;  %s924_s10 = smov 16  }
  0x26   : > { %781 = dma.hbm_to_vmem [thread:$0]  (!%p1018_p9), %s1014_s11, 2048, %s1022_s13, %s1024_s15, %s923_s9, %s923_s9, %s924_s10  }
  0x27   : > { %p718_p11 = scmp.ge.s32.totalorder %s920_s23, 1  ;;  %p219_p13 = scmp.lt.s32.totalorder %s920_s23, 3 }
  0x29   : > { %p220_p3 = pnand %p718_p11, %p219_p13 }
  0x2a   : > { %s225_s12 = sand.u32 (!%p220_p3), 1, %s904_s19  }
  0x2b   : > { %223 = sbr.rel (%p220_p3) target bundleno = 806 (0x326), region = 40  ;;  %s719_s16 = sshll.u32 (!%p220_p3), %s225_s12, 7 }
  0x2c   : > { %s226_s17 = scalar_lea.sflag (!%p220_p3), [#allocation4], %s225_s12  ;;  %s229_s18 = scalar_lea.vmem (!%p220_p3), [#allocation3], %s719_s16 }
  0x32   : > { %895 = dma.done.wait (%p1001_p7), %s226_s17, 2048  }
  0x33   : > { %897 = vsyncadd (%p1001_p7), %s226_s17, 4294965248  ;;  %v274_v0 = vld [vmem:[%s229_s18] sm:$0xff]  ;;  %v282_v1 = vld [vmem:[%s229_s18 + $0x8] sm:$0xff]  ;;  %v925_v27 = vmov 0.0|0.0   ;;  %vm926_vm0 = vmmov 0   ;;  %v927_v37 = vmov 0.0   ;;  %v374_v38 = vlaneseq }
  0x34   : > { %v276_v2 = vld [vmem:[%s229_s18 + $0x20] sm:$0xff]  ;;  %v290_v3 = vadd.f32 %v282_v1, %v274_v0  ;;  %v284_v4 = vld [vmem:[%s229_s18 + $0x28] sm:$0xff]  ;;  %v275_v5 = vld [vmem:[%s229_s18 + $0x10] sm:$0xff]  ;;  %764 = vmatprep.subr.bf16.mxu0 %v925_v27  ;;  %756 = vmatprep.mubr.msk.f32.mxu0 %vm926_vm0, %v927_v37  ;;  %vm385_vm1 = vcmask 130112   ;;  %vm392_vm2 = vcmask 195712   ;;  %vm399_vm3 = vcmask 261312  }
  0x35   : > { %v283_v6 = vld [vmem:[%s229_s18 + $0x18] sm:$0xff]  ;;  %v292_v7 = vadd.f32 %v284_v4, %v276_v2  ;;  %v277_v8 = vld [vmem:[%s229_s18 + $0x30] sm:$0xff]  ;;  %v278_v12 = vld [vmem:[%s229_s18 + $0x40] sm:$0xff]  ;;  %759 = vmatprep.subr.mxu1 %v927_v37  ;;  %761 = vmatprep.mubr.msk.f32.mxu1 %vm926_vm0, %v927_v37  ;;  %v375_v39 = vand.u32 127, %v374_v38  ;;  %v1083_v40 = vshrl.u32 %v374_v38, 7  ;;  %vm406_vm4 = vcmask 326912  }
  0x36   : > { %v285_v9 = vld [vmem:[%s229_s18 + $0x38] sm:$0xff]  ;;  %333 = vadd.xlane.f32.xlu0 %v290_v3  ;;  %v291_v10 = vadd.f32 %v283_v6, %v275_v5  ;;  %v286_v13 = vld [vmem:[%s229_s18 + $0x48] sm:$0xff]  ;;  %v279_v14 = vld [vmem:[%s229_s18 + $0x50] sm:$0xff]  ;;  %vm413_vm5 = vcmask 392512   ;;  %vm420_vm6 = vcmask 458112   ;;  %vm427_vm7 = vcmask 523712  }
  0x37   : > { %337 = vadd.xlane.f32.xlu1 %v292_v7  ;;  %v293_v11 = vadd.f32 %v285_v9, %v277_v8  ;;  %v287_v15 = vld [vmem:[%s229_s18 + $0x58] sm:$0xff]  ;;  %v294_v16 = vadd.f32 %v286_v13, %v278_v12  ;;  %v280_v18 = vld [vmem:[%s229_s18 + $0x60] sm:$0xff]  ;;  %v288_v19 = vld [vmem:[%s229_s18 + $0x68] sm:$0xff]  ;;  %v380_v41 = vadd.s32 4294967288, %v375_v39  ;;  %v387_v43 = vadd.s32 4294967280, %v375_v39  ;;  %p257_p7 = scmp.lt.s32.totalorder %s912_s21, 1 }
  0x38   : > { %v295_v17 = vadd.f32 %v287_v15, %v279_v14  ;;  %v281_v20 = vld [vmem:[%s229_s18 + $0x70] sm:$0xff]  ;;  %v289_v21 = vld [vmem:[%s229_s18 + $0x78] sm:$0xff]  ;;  %v296_v22 = vadd.f32 %v288_v19, %v280_v18  ;;  %v357_v24 = vld [vmem:[%s1136_s1] sm:$0xff]  ;;  %v394_v44 = vadd.s32 4294967272, %v375_v39  ;;  %v378_v46 = vsub.s32 %v375_v39, %v1083_v40 }
  0x39   : > { %v297_v23 = vadd.f32 %v289_v21, %v281_v20  ;;  %v358_v25 = vld [vmem:[%s1136_s1 + $0x8] sm:$0xff]  ;;  %v359_v28 = vld [vmem:[%s1136_s1 + $0x10] sm:$0xff]  ;;  %v360_v29 = vld [vmem:[%s1136_s1 + $0x18] sm:$0xff]  ;;  %v383_v48 = vsub.s32 %v380_v41, %v1083_v40  ;;  %v401_v49 = vadd.s32 4294967264, %v375_v39  ;;  %v390_v50 = vsub.s32 %v387_v43, %v1083_v40  ;;  %s1152_s21 = smov (!%p257_p7, %s912_s21), 1 }
  0x3a   : > { %335 = vadd.xlane.f32.xlu0 %v291_v10  ;;  %v765_v26 = vpack.c.bf16 %v358_v25, %v357_v24  ;;  %v768_v30 = vpack.c.bf16 %v360_v29, %v359_v28  ;;  %v361_v31 = vld [vmem:[%s1136_s1 + $0x20] sm:$0xff]  ;;  %v362_v32 = vld [vmem:[%s1136_s1 + $0x28] sm:$0xff]  ;;  %v363_v34 = vld [vmem:[%s1136_s1 + $0x30] sm:$0xff]  ;;  %v397_v53 = vsub.s32 %v394_v44, %v1083_v40  ;;  %v408_v54 = vadd.s32 4294967256, %v375_v39  ;;  %s728_s15 = sshll.u32 %s1152_s21, 6 }
  0x3b   : > { %339 = vadd.xlane.f32.xlu1 %v293_v11  ;;  %v771_v33 = vpack.c.bf16 %v362_v32, %v361_v31  ;;  %v364_v35 = vld [vmem:[%s1136_s1 + $0x38] sm:$0xff]  ;;  %v404_v60 = vsub.s32 %v401_v49, %v1083_v40  ;;  %v415_v61 = vadd.s32 4294967248, %v375_v39  ;;  %v422_v2 = vadd.s32 4294967240, %v375_v39  ;;  %v365_v24 = vld [vmem:[%s1137_s2] sm:$0x1]  ;;  %s261_s27 = scalar_lea.vmem %s1140_s5, %s728_s15 }
  0x3c   : > { %766 = vmatpush3.bf16.msra.mxu0 %v765_v26  ;;  %v774_v36 = vpack.c.bf16 %v364_v35, %v363_v34  ;;  %v411_v1 = vsub.s32 %v408_v54, %v1083_v40  ;;  %vm429_vm8 = vcmask 523264   ;;  %vm509_vm9 = vcmask 1043456   ;;  %v504_v29 = vld [vmem:[%s1139_s4] sm:$0x1] }
  0x3d   : > { %767 = vmatprep.subr.bf16.mxu0 %v925_v27  ;;  %v418_v10 = vsub.s32 %v415_v61, %v1083_v40  ;;  %v425_v13 = vsub.s32 %v422_v2, %v1083_v40  ;;  %vm505_vm10 = vcmask 31744   ;;  %v591_v37 = vsub.s32 0, %v1083_v40 }
  0x3e   : > { %341 = vadd.xlane.f32.xlu0 %v294_v16  ;;  %vm624_vm11 = vcmask 7168  }
  0x3f   : > { %343 = vadd.xlane.f32.xlu1 %v295_v17 }
  0x40   : > { %769 = vmatpush3.bf16.msra.mxu0 %v768_v30 }
  0x41   : > { %770 = vmatprep.subr.bf16.mxu0 %v925_v27 }
  0x42   : > { %345 = vadd.xlane.f32.xlu0 %v296_v22 }
  0x43   : > { %347 = vadd.xlane.f32.xlu1 %v297_v23  ;;  %v503_v23 = vld [vmem:[%s1138_s3] sm:$0xf] }
  0x44   : > { %772 = vmatpush3.bf16.msra.mxu0 %v771_v33  ;;  %760 = vmatpush3.msk.msra.mxu1 %vm509_vm9, %v503_v23 }
  0x45   : > { %773 = vmatprep.subr.bf16.mxu0 %v925_v27 }
  0x48   : > { %775 = vmatpush3.bf16.msra.mxu0 %v774_v36 }
  0xc3   : > { %v334_v42 = vpop.xlane.xlu0 %333 }
  0xc4   : > { %v338_v45 = vpop.xlane.xlu1 %337  ;;  %v349_v47 = vmul.f32 0.00390625, %v334_v42 }
  0xc5   : > { %v351_v51 = vmul.f32 0.00390625, %v338_v45 }
  0xc6   : > { %v379_v58 = vrot.slane %v349_v47, %v378_v46 }
  0xc7   : > { %v336_v52 = vpop.xlane.xlu0 %335  ;;  %v391_v62 = vrot.slane %v351_v51, %v390_v50 }
  0xc8   : > { %v350_v55 = vmul.f32 0.00390625, %v336_v52  ;;  %v340_v56 = vpop.xlane.xlu1 %339 }
  0xc9   : > { %v352_v57 = vmul.f32 0.00390625, %v340_v56 }
  0xca   : > { %v384_v59 = vrot.slane %v350_v55, %v383_v48 }
  0xcb   : > { %v398_v63 = vrot.slane %v352_v57, %v397_v53  ;;  %v342_v0 = vpop.xlane.xlu0 %341 }
  0xcc   : > { %v386_v3 = vsel %vm385_vm1, %v384_v59, %v379_v58  ;;  %v353_v4 = vmul.f32 0.00390625, %v342_v0  ;;  %v344_v5 = vpop.xlane.xlu1 %343 }
  0xcd   : > { %v393_v6 = vsel %vm392_vm2, %v391_v62, %v386_v3  ;;  %v354_v7 = vmul.f32 0.00390625, %v344_v5 }
  0xce   : > { %v400_v8 = vsel %vm399_vm3, %v398_v63, %v393_v6  ;;  %v405_v9 = vrot.slane %v353_v4, %v404_v60 }
  0xcf   : > { %v412_v11 = vrot.slane %v354_v7, %v411_v1  ;;  %v346_v12 = vpop.xlane.xlu0 %345 }
  0xd0   : > { %v407_v14 = vsel %vm406_vm4, %v405_v9, %v400_v8  ;;  %v355_v15 = vmul.f32 0.00390625, %v346_v12  ;;  %v348_v16 = vpop.xlane.xlu1 %347 }
  0xd1   : > { %v356_v17 = vmul.f32 0.00390625, %v348_v16  ;;  %v414_v19 = vsel %vm413_vm5, %v412_v11, %v407_v14 }
  0xd2   : > { %v419_v18 = vrot.slane %v355_v15, %v418_v10 }
  0xd3   : > { %v426_v20 = vrot.slane %v356_v17, %v425_v13 }
  0xd4   : > { %v421_v21 = vsel %vm420_vm6, %v419_v18, %v414_v19 }
  0xd5   : > { %v428_v22 = vsel %vm427_vm7, %v426_v20, %v421_v21 }
  0xd6   : > { %757 = vmatmul.mubr.msk.f32.vlgmr.msra.gmra.mrb[0].mxu0 %vm429_vm8, %v428_v22 }
 0x1a9   : > { %v498_v25 = vpop.f32.mrb[0].mxu0 }
 0x1aa   : > { %v499_v26 = vadd.f32 %v498_v25, %v365_v24  ;;  %v758_v27 = vpop.f32.mrb[1].mxu0 }
 0x1ac   : > { %v502_v28 = vmax.f32 %v499_v26, 0.0 }
 0x1ae   : > { %762 = vmatmul.mubr.msk.f32.vlgmr.msra.gmra.mrb[0].mxu1 %vm505_vm10, %v502_v28 }
 0x281   : > { %v579_v30 = vpop.f32.mrb[0].mxu1 }
 0x282   : > { %v580_v31 = vadd.f32 %v579_v30, %v504_v29  ;;  %v763_v32 = vpop.f32.mrb[1].mxu1 }
 0x284   : > { %v583_v33 = vsub.f32 0.0, %v580_v31 }
 0x286   : > { %v584_v34 = vmul.f32 1.442695, %v583_v33 }
 0x288   : > { %836 = vpow2.f32 %v584_v34 }
 0x292   : > { %v837_v35 = vpop.eup %836 }
 0x293   : > { %v586_v36 = vadd.f32 1.0, %v837_v35 }
 0x295   : > { %838 = vrcp.f32 %v586_v36 }
 0x29f   : > { %v839_v38 = vpop.eup %838 }
 0x2a0   : > { %v592_v39 = vrot.slane %v839_v38, %v591_v37 }
 0x2a2   : > { %598 = vbcast.lane.b32.xlu1 %v592_v39, 264  ;;  %594 = vbcast.lane.b32.xlu0 %v592_v39, 256 }
 0x2a6   : > { %602 = vbcast.lane.b32.xlu1 %v592_v39, 272  ;;  %610 = vbcast.lane.b32.xlu0 %v592_v39, 288 }
 0x2aa   : > { %606 = vbcast.lane.b32.xlu1 %v592_v39, 280  ;;  %618 = vbcast.lane.b32.xlu0 %v592_v39, 304 }
 0x2ae   : > { %614 = vbcast.lane.b32.xlu1 %v592_v39, 296 }
 0x2b2   : > { %622 = vbcast.lane.b32.xlu1 %v592_v39, 312 }
 0x314   : > { %v599_v41 = vpop.permute.xlu1 %598  ;;  %v595_v40 = vpop.permute.xlu0 %594 }
 0x315   : > { %626 = vst.msk [vmem:[%s261_s27 + $0x8] sm:$0xff] %vm624_vm11, %v599_v41  ;;  %625 = vst.msk [vmem:[%s261_s27] sm:$0xff] %vm624_vm11, %v595_v40 }
 0x318   : > { %v603_v42 = vpop.permute.xlu1 %602  ;;  %v611_v43 = vpop.permute.xlu0 %610 }
 0x319   : > { %627 = vst.msk [vmem:[%s261_s27 + $0x10] sm:$0xff] %vm624_vm11, %v603_v42  ;;  %629 = vst.msk [vmem:[%s261_s27 + $0x20] sm:$0xff] %vm624_vm11, %v611_v43 }
 0x31c   : > { %v607_v44 = vpop.permute.xlu1 %606  ;;  %v619_v45 = vpop.permute.xlu0 %618 }
 0x31d   : > { %628 = vst.msk [vmem:[%s261_s27 + $0x18] sm:$0xff] %vm624_vm11, %v607_v44  ;;  %631 = vst.msk [vmem:[%s261_s27 + $0x30] sm:$0xff] %vm624_vm11, %v619_v45 }
 0x320   : > { %v615_v46 = vpop.permute.xlu1 %614 }
 0x321   : > { %630 = vst.msk [vmem:[%s261_s27 + $0x28] sm:$0xff] %vm624_vm11, %v615_v46 }
 0x324   : > { %v623_v47 = vpop.permute.xlu1 %622 }
 0x325   : > { %632 = vst.msk [vmem:[%s261_s27 + $0x38] sm:$0xff] %vm624_vm11, %v623_v47 }
 0x326 PF: > { %s18_s23 = sadd.s32 1, %s920_s23   ;;  %s1144_s18 = smov %s904_s19 }
 0x327   : > { %p15_p9 = scmp.ge.s32.totalorder %s18_s23, 4   ;;  %s1145_s19 = smov %s908_s20 }
 0x328   : > { %s1146_s20 = smov %s1007_s30  ;;  %s1147_s21 = smov %s916_s22 }
 0x329   : > { %s1148_s22 = smov %s1150_s25  ;;  %17 = sbr.rel (!%p15_p9) target bundleno = 4 (0x4), region = 88 }
 0x330   :  { %654 = vsyncpa [#allocation4], 1 }
 0x331   :  { %656 = vsyncpa [#allocation4 + $0x1], 1 }

</bundles_post_ra>
